<compile_context>
chip_gen: v7x
topology: tpu7x:2x2x1
jax: 0.10.0
libtpu: 0.0.40
codegen_flags: <defaults>
</compile_context>

<pallas_src>
import jax
import jax.numpy as jnp
from jax.experimental import pallas as pl
from jax.experimental.pallas import tpu as pltpu


def _round_up(x, m):
    return ((x + m - 1) // m) * m


def _cdiv(a, b):
    return (a + b - 1) // b


def _default_vmem_budget():
    """Generation-aware VMEM budget: ~3/4 of physical VMEM, conservative fallback."""
    phys = 64 * 1024 * 1024  # conservative (v7x per-TC physical VMEM)
    try:
        info = pltpu.get_tpu_info()
        phys = int(getattr(info, "vmem_capacity_bytes", phys))
    except Exception:
        pass
    return max(32 * 1024 * 1024, (phys * 3) // 4)


def _make_kernel(row_chunk, n_chunks):
    """Two stacked Linear layers, no activation; optional inner row-chunking."""

    def kernel(x_ref, w1_ref, b1_ref, w2_ref, b2_ref, o_ref):
        w1 = w1_ref[...]
        b1 = b1_ref[...].astype(jnp.float32)
        w2 = w2_ref[...]
        b2 = b2_ref[...].astype(jnp.float32)

        def compute(x):
            # Layer 1: [rows, d_in] @ [d_in, hid_p] + b1   (f32 MXU accumulation)
            h = jnp.dot(x, w1, preferred_element_type=jnp.float32) + b1
            # Layer 2: [rows, hid_p] @ [hid_p, d_out] + b2 (no non-linearity)
            y = jnp.dot(h.astype(w2.dtype), w2,
                        preferred_element_type=jnp.float32) + b2
            return y.astype(o_ref.dtype)

        if n_chunks == 1:
            o_ref[...] = compute(x_ref[...])
        else:
            def body(c, carry):
                r = pl.multiple_of(c * row_chunk, row_chunk)
                o_ref[pl.ds(r, row_chunk), :] = compute(
                    x_ref[pl.ds(r, row_chunk), :])
                return carry

            jax.lax.fori_loop(0, n_chunks, body, None, unroll=True)

    return kernel


def non_seq_model_forward(x, w1, b1, w2, b2, *, vmem_budget_bytes=None):
    """Pallas forward for NonSeqModel (num_mlp=2, with_non_linearity=False).

    x  : [batch, input_dim]
    w1 : [input_dim, hidden_dim]   (transposed PyTorch weight)
    b1 : [hidden_dim] or [1, hidden_dim]
    w2 : [hidden_dim, output_dim]  (transposed PyTorch weight)
    b2 : [output_dim] or [1, output_dim]
    returns [batch, output_dim]
    """
    batch, d_in = x.shape
    hid = w1.shape[1]
    d_out = w2.shape[1]
    assert w1.shape == (d_in, hid)
    assert w2.shape == (hid, d_out)

    dtype = x.dtype
    itemsize = jnp.dtype(dtype).itemsize

    if vmem_budget_bytes is None:
        vmem_budget_bytes = _default_vmem_budget()

    # ---- Pad ONLY the hidden dim to lane width (weights are tiny, read once).
    #      d_in (streamed read bytes) and d_out (streamed write bytes) stay
    #      unpadded in HBM — this kernel is memory bound.
    hid_p = _round_up(hid, 128)
    pad_h = hid_p - hid
    w1_p = jnp.pad(w1, ((0, 0), (0, pad_h)))
    b1_p = jnp.pad(jnp.reshape(b1, (1, hid)), ((0, 0), (0, pad_h)))
    w2_p = jnp.pad(w2, ((0, pad_h), (0, 0)))
    b2_p = jnp.reshape(b2, (1, d_out))

    # ---- Batch-tile selection.
    weight_bytes = (w1_p.size + b1_p.size + w2_p.size + b2_p.size) * itemsize
    fixed_bytes = 2 * weight_bytes               # resident specs still 2-buffered
    per_row_bytes = (2 * (d_in + d_out) * itemsize   # x / y double buffers
                     + (hid_p + d_out) * 4)          # f32 intermediates
    avail = max(vmem_budget_bytes - fixed_bytes, per_row_bytes * 8)
    tb_cap = max(8, min(4096, (avail // per_row_bytes) // 8 * 8))

    n_tiles = _cdiv(batch, tb_cap)
    if batch >= 512:
        # v7x: give both TensorCores work ("parallel" grid axis); make it even.
        n_tiles = max(n_tiles, 2)
        n_tiles += n_tiles % 2
    tb = _round_up(_cdiv(batch, n_tiles), 8)

    # Inner row-chunking keeps the f32 intermediate small for very large tiles.
    if tb > 1024:
        row_chunk = 256
        tb = _round_up(tb, row_chunk)
    else:
        row_chunk = tb
    n_chunks = tb // row_chunk

    padded_batch = n_tiles * tb
    x_p = jnp.pad(x, ((0, padded_batch - batch), (0, 0))) \
        if padded_batch != batch else x

    flops = 2 * padded_batch * hid_p * (d_in + d_out)
    bytes_accessed = (x_p.size + w1_p.size + b1_p.size + w2_p.size + b2_p.size
                      + padded_batch * d_out) * itemsize

    out = pl.pallas_call(
        _make_kernel(row_chunk, n_chunks),
        out_shape=jax.ShapeDtypeStruct((padded_batch, d_out), dtype),
        grid=(n_tiles,),
        in_specs=[
            pl.BlockSpec((tb, d_in), lambda i: (i, 0)),        # x: streamed
            pl.BlockSpec((d_in, hid_p), lambda i: (0, 0)),     # w1: resident
            pl.BlockSpec((1, hid_p), lambda i: (0, 0)),        # b1: resident
            pl.BlockSpec((hid_p, d_out), lambda i: (0, 0)),    # w2: resident
            pl.BlockSpec((1, d_out), lambda i: (0, 0)),        # b2: resident
        ],
        out_specs=pl.BlockSpec((tb, d_out), lambda i: (i, 0)),
        compiler_params=pltpu.CompilerParams(
            dimension_semantics=("parallel",),
            vmem_limit_bytes=int(vmem_budget_bytes),
        ),
        cost_estimate=pl.CostEstimate(
            flops=int(flops), transcendentals=0,
            bytes_accessed=int(bytes_accessed)),
    )(x_p, w1_p, b1_p, w2_p, b2_p)

    return out[:batch] if padded_batch != batch else out


def init_params(key, input_dim, hidden_dim, output_dim, dtype=jnp.float32):
    """Deterministic init matching nn.Linear's U(-1/sqrt(fan_in), 1/sqrt(fan_in))."""
    k1, k2, k3, k4 = jax.random.split(key, 4)
    lim1 = 1.0 / jnp.sqrt(jnp.array(input_dim, dtype))
    lim2 = 1.0 / jnp.sqrt(jnp.array(hidden_dim, dtype))
    # Stored as [in, out] (i.e. PyTorch weight transposed).
    w1 = jax.random.uniform(k1, (input_dim, hidden_dim), dtype, -lim1, lim1)
    b1 = jax.random.uniform(k2, (1, hidden_dim), dtype, -lim1, lim1)
    w2 = jax.random.uniform(k3, (hidden_dim, output_dim), dtype, -lim2, lim2)
    b2 = jax.random.uniform(k4, (1, output_dim), dtype, -lim2, lim2)
    return w1, b1, w2, b2


if __name__ == "__main__":
    # Small shapes consistent with the module: MLP over OHE feature vectors.
    batch, input_dim, hidden_dim, output_dim = 8, 64, 32, 16

    key = jax.random.PRNGKey(0)
    kx, kp = jax.random.split(key)
    x = jax.random.normal(kx, (batch, input_dim), jnp.float32)
    w1, b1, w2, b2 = init_params(kp, input_dim, hidden_dim, output_dim)

    out = jax.block_until_ready(non_seq_model_forward(x, w1, b1, w2, b2))

    # Pure-JAX reference check (same math as the PyTorch forward).
    ref = (x @ w1 + b1) @ w2 + b2
    assert out.shape == (batch, output_dim)
    assert jnp.allclose(out, ref, atol=1e-4, rtol=1e-4)

    # Exercise the multi-tile (grid >= 2) + ragged-batch padding path.
    x_big = jax.random.normal(jax.random.PRNGKey(1), (520, input_dim),
                              jnp.float32)
    out_big = jax.block_until_ready(
        non_seq_model_forward(x_big, w1, b1, w2, b2))
    ref_big = (x_big @ w1 + b1) @ w2 + b2
    assert out_big.shape == (520, output_dim)
    assert jnp.allclose(out_big, ref_big, atol=1e-4, rtol=1e-4)

    print("KERNEL_OK")
</pallas_src>

<mosaic_0001>
module attributes {stable_mosaic.version = 11 : i64} {
  func.func @kernel(%arg0: i32, %arg1: memref<8x64xf32, #tpu.memory_space<vmem>>, %arg2: memref<64x128xf32, #tpu.memory_space<vmem>>, %arg3: memref<1x128xf32, #tpu.memory_space<vmem>>, %arg4: memref<128x16xf32, #tpu.memory_space<vmem>>, %arg5: memref<1x16xf32, #tpu.memory_space<vmem>>, %arg6: memref<8x16xf32, #tpu.memory_space<vmem>>) attributes {dimension_semantics = [#tpu.dimension_semantics<parallel>], iteration_bounds = array<i64: 1>, scalar_prefetch = 0 : i64, scratch_operands = 0 : i64, tpu.core_type = #tpu.core_type<tc>, window_params = [{transform_indices = @transform_0, window_bounds = array<i64: 8, 64>}, {pipeline_mode = #tpu.pipeline_mode<synchronous>, transform_indices = @transform_1, window_bounds = array<i64: 64, 128>}, {pipeline_mode = #tpu.pipeline_mode<synchronous>, transform_indices = @transform_2, window_bounds = array<i64: 1, 128>}, {pipeline_mode = #tpu.pipeline_mode<synchronous>, transform_indices = @transform_3, window_bounds = array<i64: 128, 16>}, {pipeline_mode = #tpu.pipeline_mode<synchronous>, transform_indices = @transform_4, window_bounds = array<i64: 1, 16>}, {transform_indices = @transform_5, window_bounds = array<i64: 8, 16>}]} {
    %c0 = arith.constant 0 : index
    %c0_0 = arith.constant 0 : index
    %0 = vector.load %arg2[%c0, %c0_0] : memref<64x128xf32, #tpu.memory_space<vmem>>, vector<64x128xf32>
    %c0_1 = arith.constant 0 : index
    %c0_2 = arith.constant 0 : index
    %1 = vector.load %arg3[%c0_1, %c0_2] : memref<1x128xf32, #tpu.memory_space<vmem>>, vector<1x128xf32>
    %c0_3 = arith.constant 0 : index
    %c0_4 = arith.constant 0 : index
    %2 = vector.load %arg4[%c0_3, %c0_4] : memref<128x16xf32, #tpu.memory_space<vmem>>, vector<128x16xf32>
    %c0_5 = arith.constant 0 : index
    %c0_6 = arith.constant 0 : index
    %3 = vector.load %arg5[%c0_5, %c0_6] : memref<1x16xf32, #tpu.memory_space<vmem>>, vector<1x16xf32>
    %c0_7 = arith.constant 0 : index
    %c0_8 = arith.constant 0 : index
    %4 = vector.load %arg1[%c0_7, %c0_8] : memref<8x64xf32, #tpu.memory_space<vmem>>, vector<8x64xf32>
    %cst = arith.constant dense<0.000000e+00> : vector<8x128xf32>
    %5 = tpu.matmul %4, %0, %cst {dimension_numbers = #tpu.dot_dimension_numbers<[1], [0], [0], [1], [0, 0, 1, 1], [], []>} : vector<8x64xf32>, vector<64x128xf32>, vector<8x128xf32> -> vector<8x128xf32>
    %6 = vector.broadcast %1 : vector<1x128xf32> to vector<8x128xf32>
    %7 = arith.addf %5, %6 : vector<8x128xf32>
    %cst_9 = arith.constant dense<0.000000e+00> : vector<8x16xf32>
    %8 = tpu.matmul %7, %2, %cst_9 {dimension_numbers = #tpu.dot_dimension_numbers<[1], [0], [0], [1], [0, 0, 1, 1], [], []>} : vector<8x128xf32>, vector<128x16xf32>, vector<8x16xf32> -> vector<8x16xf32>
    %9 = vector.broadcast %3 : vector<1x16xf32> to vector<8x16xf32>
    %10 = arith.addf %8, %9 : vector<8x16xf32>
    %c0_10 = arith.constant 0 : index
    %c0_11 = arith.constant 0 : index
    %11 = vector.load %arg6[%c0_10, %c0_11] : memref<8x16xf32, #tpu.memory_space<vmem>>, vector<8x16xf32>
    tpu.vector_store %arg6[%c0_10, %c0_11], %10 {strides = array<i32>} : memref<8x16xf32, #tpu.memory_space<vmem>>, vector<8x16xf32>,
    return
  }
  func.func @transform_0(%arg0: i32) -> (i32, i32) {
    %c0_i32 = arith.constant 0 : i32
    %c0_i32_0 = arith.constant 0 : i32
    return %arg0, %c0_i32 : i32, i32
  }
  func.func @transform_1(%arg0: i32) -> (i32, i32) {
    %c0_i32 = arith.constant 0 : i32
    %c0_i32_0 = arith.constant 0 : i32
    %c0_i32_1 = arith.constant 0 : i32
    return %c0_i32, %c0_i32_0 : i32, i32
  }
  func.func @transform_2(%arg0: i32) -> (i32, i32) {
    %c0_i32 = arith.constant 0 : i32
    %c0_i32_0 = arith.constant 0 : i32
    %c0_i32_1 = arith.constant 0 : i32
    return %c0_i32, %c0_i32_0 : i32, i32
  }
  func.func @transform_3(%arg0: i32) -> (i32, i32) {
    %c0_i32 = arith.constant 0 : i32
    %c0_i32_0 = arith.constant 0 : i32
    %c0_i32_1 = arith.constant 0 : i32
    return %c0_i32, %c0_i32_0 : i32, i32
  }
  func.func @transform_4(%arg0: i32) -> (i32, i32) {
    %c0_i32 = arith.constant 0 : i32
    %c0_i32_0 = arith.constant 0 : i32
    %c0_i32_1 = arith.constant 0 : i32
    return %c0_i32, %c0_i32_0 : i32, i32
  }
  func.func @transform_5(%arg0: i32) -> (i32, i32) {
    %c0_i32 = arith.constant 0 : i32
    %c0_i32_0 = arith.constant 0 : i32
    return %arg0, %c0_i32 : i32, i32
  }
}

</mosaic_0001>

<bundles_post_ra>
// kernel: tpu_custom_call.1
= control target key start
LH: loop header
LB: loop body
LE: loop exit
PB: predicated region body
PF: predicated region fallthrough
CT: control target
= control target key end

     0   :  { %v367_v3 = vmov 0.0|0.0   ;;  %vm368_vm0 = vmmov 0   ;;  %v369_v6 = vmov 0.0   ;;  %s494_s0 = inlined_call_operand.vmem [shape: f32[8,64], index: 0, kind: input, shape index: {}]   ;;  %s495_s1 = inlined_call_operand.vmem [shape: f32[64,128], index: 1, kind: input, shape index: {}]   ;;  %s496_s2 = inlined_call_operand.vmem [shape: f32[1,128], index: 2, kind: input, shape index: {}]   ;;  %s497_s3 = inlined_call_operand.vmem [shape: f32[128,16], index: 3, kind: input, shape index: {}]   ;;  %s498_s4 = inlined_call_operand.vmem [shape: f32[1,16], index: 4, kind: input, shape index: {}]   ;;  %s499_s5 = inlined_call_operand.hbm [shape: f32[8,16], index: 5, kind: output, shape index: {}]  }
   0x1   :  { %v21_v0 = vld [vmem:[%s495_s1] sm:$0xff]  ;;  %v22_v1 = vld [vmem:[%s495_s1 + $0x8] sm:$0xff]  ;;  %v23_v2 = vld [vmem:[%s495_s1 + $0x10] sm:$0xff]  ;;  %303 = vmatprep.subr.bf16.mxu0 %v367_v3  ;;  %265 = vmatprep.mubr.msk.f32.mxu0 %vm368_vm0, %v369_v6 }
   0x2   :  { %v304_v4 = vpack.c.bf16 %v22_v1, %v21_v0  ;;  %v24_v5 = vld [vmem:[%s495_s1 + $0x18] sm:$0xff]  ;;  %315 = vmatprep.subr.bf16.mxu1 %v367_v3  ;;  %300 = vmatprep.mubr.msk.f32.mxu1 %vm368_vm0, %v369_v6  ;;  %v30_v8 = vld [vmem:[%s497_s3] sm:$0xff]  ;;  %v31_v9 = vld [vmem:[%s497_s3 + $0x8] sm:$0xff] }
   0x3   :  { %v307_v7 = vpack.c.bf16 %v24_v5, %v23_v2  ;;  %v32_v10 = vld [vmem:[%s497_s3 + $0x10] sm:$0xff]  ;;  %v25_v11 = vld [vmem:[%s495_s1 + $0x20] sm:$0xff]  ;;  %v26_v12 = vld [vmem:[%s495_s1 + $0x28] sm:$0xff]  ;;  %v316_v13 = vpack.c.bf16 %v31_v9, %v30_v8 }
   0x4   :  { %305 = vmatpush3.bf16.msra.mxu0 %v304_v4  ;;  %v33_v14 = vld [vmem:[%s497_s3 + $0x18] sm:$0xff]  ;;  %v310_v16 = vpack.c.bf16 %v26_v12, %v25_v11  ;;  %v34_v17 = vld [vmem:[%s497_s3 + $0x20] sm:$0xff]  ;;  %v35_v18 = vld [vmem:[%s497_s3 + $0x28] sm:$0xff] }
   0x5   :  { %306 = vmatprep.subr.bf16.mxu0 %v367_v3  ;;  %317 = vmatpush3.bf16.msra.mxu1 %v316_v13  ;;  %v319_v15 = vpack.c.bf16 %v33_v14, %v32_v10  ;;  %v27_v19 = vld [vmem:[%s495_s1 + $0x30] sm:$0xff]  ;;  %v28_v20 = vld [vmem:[%s495_s1 + $0x38] sm:$0xff] }
   0x6   :  { %318 = vmatprep.subr.bf16.mxu1 %v367_v3 }
   0x8   :  { %308 = vmatpush3.bf16.msra.mxu0 %v307_v7 }
   0x9   :  { %309 = vmatprep.subr.bf16.mxu0 %v367_v3 }
   0xa   :  { %10 = vsyncpa [#allocation3], 0  ;;  %320 = vmatpush3.bf16.msra.mxu1 %v319_v15  ;;  %v322_v21 = vpack.c.bf16 %v35_v18, %v34_v17  ;;  %v313_v22 = vpack.c.bf16 %v28_v20, %v27_v19  ;;  %v36_v23 = vld [vmem:[%s497_s3 + $0x30] sm:$0xff]  ;;  %v37_v24 = vld [vmem:[%s497_s3 + $0x38] sm:$0xff]  ;;  %vm54_vm1 = vcmask 523264   ;;  %s370_s20 = smov [#allocation2]  }
   0xb   :  { %321 = vmatprep.subr.bf16.mxu1 %v367_v3  ;;  %v325_v25 = vpack.c.bf16 %v37_v24, %v36_v23  ;;  %v47_v26 = vld [vmem:[%s494_s0] sm:$0xff]  ;;  %v39_v28 = vld [vmem:[%s497_s3 + $0x48] sm:$0xff]  ;;  %v40_v30 = vld [vmem:[%s497_s3 + $0x50] sm:$0xff]  ;;  %s212_s21 = sshll.u32 %s370_s20, 4  ;;  %vm204_vm2 = vcmask 130048   ;;  %s213_s21 = int_to_ptr.vmem [resolvable:$true] %s212_s21 }
   0xc   :  { %311 = vmatpush3.bf16.msra.mxu0 %v310_v16  ;;  %v38_v27 = vld [vmem:[%s497_s3 + $0x40] sm:$0xff]  ;;  %v41_v31 = vld [vmem:[%s497_s3 + $0x58] sm:$0xff]  ;;  %v43_v34 = vld [vmem:[%s497_s3 + $0x68] sm:$0xff]  ;;  %p348_p1 = scmp.lt.s32.totalorder %s213_s21, %s213_s21 }
   0xd   :  { %312 = vmatprep.subr.bf16.mxu0 %v367_v3  ;;  %v328_v29 = vpack.c.bf16 %v39_v28, %v38_v27  ;;  %v331_v32 = vpack.c.bf16 %v41_v31, %v40_v30  ;;  %v42_v33 = vld [vmem:[%s497_s3 + $0x60] sm:$0xff]  ;;  %v44_v36 = vld [vmem:[%s497_s3 + $0x70] sm:$0xff]  ;;  %v45_v37 = vld [vmem:[%s497_s3 + $0x78] sm:$0xff]  ;;  %s343_s3 = scalar_lea.vmem %s213_s21, 128 }
   0xe   :  { %323 = vmatpush3.bf16.msra.mxu1 %v322_v21  ;;  %v334_v35 = vpack.c.bf16 %v43_v34, %v42_v33  ;;  %v337_v38 = vpack.c.bf16 %v45_v37, %v44_v36  ;;  %v220_v39 = vld [vmem:[%s496_s2] ss:$0 sm:$0xff]  ;;  %p344_p0 = scmp.ne.s32.totalorder %s213_s21, %s343_s3  ;;  %p349_p2 = scmp.lt.s32.totalorder %s343_s3, %s343_s3 }
   0xf   :  { %324 = vmatprep.subr.bf16.mxu1 %v367_v3  ;;  %v222_v43 = vld [vmem:[%s498_s4] ss:$0 sm:$0xff] }
  0x10   :  { %314 = vmatpush3.bf16.msra.mxu0 %v313_v22  ;;  %p350_p3 = por %p349_p2, %p348_p1 }
  0x12   :  { %326 = vmatpush3.bf16.msra.mxu1 %v325_v25  ;;  %p351_p4 = pnand %p350_p3, %p344_p0 }
  0x13   :  { %266 = vmatmul.mubr.msk.f32.vlgmr.msra.gmra.mrb[0].mxu0 %vm54_vm1, %v47_v26  ;;  %327 = vmatprep.subr.bf16.mxu1 %v367_v3 }
  0x16   :  { %329 = vmatpush3.bf16.msra.mxu1 %v328_v29 }
  0x17   :  { %330 = vmatprep.subr.bf16.mxu1 %v367_v3 }
  0x1a   :  { %332 = vmatpush3.bf16.msra.mxu1 %v331_v32 }
  0x1b   :  { %333 = vmatprep.subr.bf16.mxu1 %v367_v3 }
  0x1e   :  { %335 = vmatpush3.bf16.msra.mxu1 %v334_v35 }
  0x1f   :  { %336 = vmatprep.subr.bf16.mxu1 %v367_v3 }
  0x22   :  { %338 = vmatpush3.bf16.msra.mxu1 %v337_v38 }
  0xe6   :  { %v124_v40 = vpop.f32.mrb[0].mxu0 }
  0xe7   :  { %v125_v41 = vadd.f32 %v220_v39, %v124_v40  ;;  %v267_v42 = vpop.f32.mrb[1].mxu0 }
  0xe9   :  { %301 = vmatmul.mubr.f32.vlgmr.msra.gmra.mrb[0].mxu1 %v125_v41 }
 0x1bc   :  { %v200_v44 = vpop.f32.mrb[0].mxu1 }
 0x1bd   :  { %v201_v45 = vadd.f32 %v222_v43, %v200_v44  ;;  %v302_v46 = vpop.f32.mrb[1].mxu1 }
 0x1bf   :  { %205 = vst.msk [vmem:[#allocation2] sm:$0xff] %vm204_vm2, %v201_v45 }
 0x1c0   :  { %354 = shalt.err (!%p351_p4)
}
 0x1c1   :  { %s355_s23 = scalar_lea.hbm %s499_s5, 128 }
 0x1c2   :  { %p356_p5 = scmp.ne.s32.totalorder %s499_s5, %s355_s23  ;;  %p359_p6 = scmp.lt.u32.totalorder %s355_s23, %s499_s5 }
 0x1c4   :  { %p361_p7 = pnand %p359_p6, %p356_p5 }
 0x1c6   :  { %364 = shalt.err (!%p361_p7)
}
 0x1c7   :  { %215 = dma.vmem_to_hbm [thread:$0]  %s213_s21, 128, %s499_s5, [#allocation3]  }
 0x1c8   :  { %365 = dma.done.wait [#allocation3], 128  }
 0x1c9   :  { %366 = vsyncadd [#allocation3], 4294967168 }
 0x1ca   :  { %219 = vsyncpa [#allocation3], 1 }

</bundles_post_ra>
